<compile_context>
chip_gen: v7x
topology: tpu7x:2x2x1
jax: 0.10.0
libtpu: 0.0.40
codegen_flags: <defaults>
</compile_context>

<pallas_src>
import jax
import jax.numpy as jnp
from jax import lax
from jax.experimental import pallas as pl
from jax.experimental.pallas import tpu as pltpu

# (in_features, out_features) per Linear layer, matching nn.Sequential order.
LAYER_DIMS = [(4, 32), (32, 64), (64, 64), (64, 32), (32, 4), (4, 2), (2, 1)]
NUM_LAYERS = len(LAYER_DIMS)
NUM_MXU_LAYERS = 5          # layers 0..4 on the MXU; Linear(4,2)/Linear(2,1) on the VPU

CHUNK = 256                 # compute tile on the lane (batch) axis
MAX_TILE_B = 4096           # DMA tile on the batch axis (multiple of CHUNK)

_MACS_PER_ROW = sum(fi * fo for fi, fo in LAYER_DIMS)                       # 8458
_PARAM_BYTES = sum(fi * fo * 2 + fo * 4 for fi, fo in LAYER_DIMS)           # bf16 W + f32 b


def _round_up(n, m):
    return ((n + m - 1) // m) * m


def _tile_b_for(batch):
    """Batch DMA tile: a multiple of CHUNK, capped at MAX_TILE_B, and chosen so
    the grid has >=2 steps whenever the batch allows (v7x dual TensorCore)."""
    if batch <= CHUNK:
        return CHUNK
    return min(MAX_TILE_B, _round_up(pl.cdiv(batch, 2), CHUNK))


def mlp_kernel(x_ref, *refs):
    """Forward pass over one (TILE_B, 4) batch tile in native (batch, feature)
    layout.  refs = (w0,b0,...,w4,b4, w5,b5,w6,b6, o_ref):
      w0..w4 : bf16 (out, in) VMEM      b0..b4 : f32 (out, 1) VMEM
      w5,b5,w6,b6 : f32 SMEM scalars for the tiny tail layers (VPU path)
      o_ref  : (1, TILE_B) f32 output block (batch on lanes -> lane-dense store)
    """
    o_ref = refs[-1]
    w5_sm, b5_sm, w6_sm, b6_sm = refs[-5:-1]
    mxu = refs[:2 * NUM_MXU_LAYERS]

    # Params are tiny (~20 KiB): load once per grid step, outside the chunk loop.
    ws = [mxu[2 * i][...] for i in range(NUM_MXU_LAYERS)]          # bf16 (out, in)
    bs = [mxu[2 * i + 1][...] for i in range(NUM_MXU_LAYERS)]      # f32  (out, 1)
    w5 = [[w5_sm[o, i] for i in range(4)] for o in range(2)]       # SMEM f32 scalars
    b5 = [b5_sm[0], b5_sm[1]]
    w6 = [w6_sm[0, 0], w6_sm[0, 1]]
    b6 = b6_sm[0]

    n_chunks = x_ref.shape[0] // CHUNK

    def chunk_body(c, carry):
        off = pl.multiple_of(c * CHUNK, CHUNK)
        xc = x_ref[pl.ds(off, CHUNK), :].astype(jnp.bfloat16)      # (CHUNK, 4)

        # Layer 0: (32,4) . (CHUNK,4)^T -> (32, CHUNK); the feature-major flip
        # is done by the contraction itself (batch lands on lanes, no transpose).
        h = lax.dot_general(ws[0], xc, (((1,), (1,)), ((), ())),
                            preferred_element_type=jnp.float32)
        h = jnp.maximum(h + bs[0], 0.0)

        # Layers 1..4 on the MXU: bf16 inputs, f32 accumulate, f32 activations.
        for i in range(1, NUM_MXU_LAYERS):
            h = jnp.dot(ws[i], h.astype(jnp.bfloat16),
                        preferred_element_type=jnp.float32)
            h = jnp.maximum(h + bs[i], 0.0)                        # (out_i, CHUNK)

        # Tail: Linear(4,2)+ReLU and Linear(2,1) on the VPU with SMEM scalars
        # (exact f32 math; removes two serial MXU push/pop sequences per chunk).
        a0, a1, a2, a3 = h[0:1, :], h[1:2, :], h[2:3, :], h[3:4, :]
        r0 = jnp.maximum(w5[0][0] * a0 + w5[0][1] * a1 +
                         w5[0][2] * a2 + w5[0][3] * a3 + b5[0], 0.0)
        r1 = jnp.maximum(w5[1][0] * a0 + w5[1][1] * a1 +
                         w5[1][2] * a2 + w5[1][3] * a3 + b5[1], 0.0)
        y = w6[0] * r0 + w6[1] * r1 + b6                           # (1, CHUNK), no ReLU

        o_ref[:, pl.ds(off, CHUNK)] = y.astype(o_ref.dtype)        # lane-dense store
        return carry

    lax.fori_loop(0, n_chunks, chunk_body, 0, unroll=True)


@jax.jit
def linear_net_forward(x, weights, biases):
    """x: [batch, 4] float32 -> [batch, 1] float32 (LinearNet.forward)."""
    batch = x.shape[0]
    x = x.astype(jnp.float32)
    tile_b = _tile_b_for(batch)
    n_tiles = pl.cdiv(batch, tile_b)

    args = [x]
    in_specs = [pl.BlockSpec((tile_b, 4), lambda i: (i, 0))]       # native layout, no pad

    # MXU layers: bf16 weights / f32 (out,1) biases, constant-index full blocks
    # -> fetched once and VMEM-resident across all grid steps.
    for li in range(NUM_MXU_LAYERS):
        w = weights[li].astype(jnp.bfloat16)
        b = biases[li].astype(jnp.float32).reshape(-1, 1)
        args += [w, b]
        in_specs += [pl.BlockSpec(w.shape, lambda i: (0, 0)),
                     pl.BlockSpec(b.shape, lambda i: (0, 0))]

    # Tail layers: tiny -> SMEM scalars for the in-kernel VPU path.
    for li in range(NUM_MXU_LAYERS, NUM_LAYERS):
        args += [weights[li].astype(jnp.float32), biases[li].astype(jnp.float32)]
        in_specs += [pl.BlockSpec(memory_space=pltpu.MemorySpace.SMEM),
                     pl.BlockSpec(memory_space=pltpu.MemorySpace.SMEM)]

    out = pl.pallas_call(
        mlp_kernel,
        out_shape=jax.ShapeDtypeStruct((1, batch), jnp.float32),
        grid=(n_tiles,),
        in_specs=in_specs,
        out_specs=pl.BlockSpec((1, tile_b), lambda i: (0, i)),
        compiler_params=pltpu.CompilerParams(
            dimension_semantics=("parallel",),
            vmem_limit_bytes=32 * 1024 * 1024),
        cost_estimate=pl.CostEstimate(
            flops=2 * _MACS_PER_ROW * batch,
            transcendentals=0,
            bytes_accessed=batch * (4 * 4 + 4) + _PARAM_BYTES),
    )(*args)

    return out[0, :].reshape(batch, 1)


def init_params(key):
    """Deterministic init mimicking torch.nn.Linear default:
    W, b ~ U(-1/sqrt(fan_in), 1/sqrt(fan_in)); weights stored as (out, in)."""
    weights, biases = [], []
    for fan_in, fan_out in LAYER_DIMS:
        key, kw, kb = jax.random.split(key, 3)
        bound = 1.0 / (float(fan_in) ** 0.5)
        weights.append(jax.random.uniform(kw, (fan_out, fan_in), jnp.float32,
                                          -bound, bound))
        biases.append(jax.random.uniform(kb, (fan_out,), jnp.float32,
                                         -bound, bound))
    return weights, biases


def reference_forward(x, weights, biases):
    """Pure-JAX f32 reference with the module's exact semantics (batch-major)."""
    h = x
    for i, (w, b) in enumerate(zip(weights, biases)):
        h = h @ w.T + b
        if i < NUM_LAYERS - 1:
            h = jnp.maximum(h, 0.0)
    return h


if __name__ == "__main__":
    key = jax.random.PRNGKey(0)
    key, kx = jax.random.split(key)

    batch = 8
    x = jax.random.normal(kx, (batch, 4), jnp.float32)
    weights, biases = init_params(key)

    out = jax.block_until_ready(linear_net_forward(x, weights, biases))
    ref = reference_forward(x, weights, biases)
    assert out.shape == (batch, 1), out.shape
    # bf16 MXU inputs with f32 accumulation: tolerance covers bf16 rounding only.
    assert jnp.allclose(out, ref, atol=5e-2, rtol=5e-2), (out, ref)

    # Larger, non-multiple batch: exercises the multi-tile pipelined grid, the
    # in-kernel chunk loop and the masked partial last tile.
    key, kx2 = jax.random.split(key)
    x2 = jax.random.normal(kx2, (1000, 4), jnp.float32)
    out2 = jax.block_until_ready(linear_net_forward(x2, weights, biases))
    ref2 = reference_forward(x2, weights, biases)
    assert out2.shape == (1000, 1), out2.shape
    assert jnp.allclose(out2, ref2, atol=5e-2, rtol=5e-2)

    print("KERNEL_OK")
</pallas_src>

<mosaic_0001>
module attributes {stable_mosaic.version = 11 : i64} {
  func.func @mlp_kernel(%arg0: i32, %arg1: memref<256x4xf32, #tpu.memory_space<vmem>>, %arg2: memref<32x4xbf16, #tpu.memory_space<vmem>>, %arg3: memref<32x1xf32, #tpu.memory_space<vmem>>, %arg4: memref<64x32xbf16, #tpu.memory_space<vmem>>, %arg5: memref<64x1xf32, #tpu.memory_space<vmem>>, %arg6: memref<64x64xbf16, #tpu.memory_space<vmem>>, %arg7: memref<64x1xf32, #tpu.memory_space<vmem>>, %arg8: memref<32x64xbf16, #tpu.memory_space<vmem>>, %arg9: memref<32x1xf32, #tpu.memory_space<vmem>>, %arg10: memref<4x32xbf16, #tpu.memory_space<vmem>>, %arg11: memref<4x1xf32, #tpu.memory_space<vmem>>, %arg12: memref<2x4xf32, #tpu.memory_space<smem>>, %arg13: memref<2xf32, #tpu.memory_space<smem>>, %arg14: memref<1x2xf32, #tpu.memory_space<smem>>, %arg15: memref<1xf32, #tpu.memory_space<smem>>, %arg16: memref<1x256xf32, #tpu.memory_space<vmem>>) attributes {dimension_semantics = [#tpu.dimension_semantics<parallel>], iteration_bounds = array<i64: 1>, scalar_prefetch = 0 : i64, scratch_operands = 0 : i64, tpu.core_type = #tpu.core_type<tc>, window_params = [{transform_indices = @transform_0, window_bounds = array<i64: 256, 4>}, {pipeline_mode = #tpu.pipeline_mode<synchronous>, transform_indices = @transform_1, window_bounds = array<i64: 32, 4>}, {pipeline_mode = #tpu.pipeline_mode<synchronous>, transform_indices = @transform_2, window_bounds = array<i64: 32, 1>}, {pipeline_mode = #tpu.pipeline_mode<synchronous>, transform_indices = @transform_3, window_bounds = array<i64: 64, 32>}, {pipeline_mode = #tpu.pipeline_mode<synchronous>, transform_indices = @transform_4, window_bounds = array<i64: 64, 1>}, {pipeline_mode = #tpu.pipeline_mode<synchronous>, transform_indices = @transform_5, window_bounds = array<i64: 64, 64>}, {pipeline_mode = #tpu.pipeline_mode<synchronous>, transform_indices = @transform_6, window_bounds = array<i64: 64, 1>}, {pipeline_mode = #tpu.pipeline_mode<synchronous>, transform_indices = @transform_7, window_bounds = array<i64: 32, 64>}, {pipeline_mode = #tpu.pipeline_mode<synchronous>, transform_indices = @transform_8, window_bounds = array<i64: 32, 1>}, {pipeline_mode = #tpu.pipeline_mode<synchronous>, transform_indices = @transform_9, window_bounds = array<i64: 4, 32>}, {pipeline_mode = #tpu.pipeline_mode<synchronous>, transform_indices = @transform_10, window_bounds = array<i64: 4, 1>}, {transform_indices = @transform_11, window_bounds = array<i64: 2, 4>}, {transform_indices = @transform_12, window_bounds = array<i64: 2>}, {transform_indices = @transform_13, window_bounds = array<i64: 1, 2>}, {transform_indices = @transform_14, window_bounds = array<i64: 1>}, {transform_indices = @transform_15, window_bounds = array<i64: 1, 256>}]} {
    %c0 = arith.constant 0 : index
    %c0_0 = arith.constant 0 : index
    %0 = vector.load %arg2[%c0, %c0_0] : memref<32x4xbf16, #tpu.memory_space<vmem>>, vector<32x4xbf16>
    %c0_1 = arith.constant 0 : index
    %c0_2 = arith.constant 0 : index
    %1 = vector.load %arg4[%c0_1, %c0_2] : memref<64x32xbf16, #tpu.memory_space<vmem>>, vector<64x32xbf16>
    %c0_3 = arith.constant 0 : index
    %c0_4 = arith.constant 0 : index
    %2 = vector.load %arg6[%c0_3, %c0_4] : memref<64x64xbf16, #tpu.memory_space<vmem>>, vector<64x64xbf16>
    %c0_5 = arith.constant 0 : index
    %c0_6 = arith.constant 0 : index
    %3 = vector.load %arg8[%c0_5, %c0_6] : memref<32x64xbf16, #tpu.memory_space<vmem>>, vector<32x64xbf16>
    %c0_7 = arith.constant 0 : index
    %c0_8 = arith.constant 0 : index
    %4 = vector.load %arg10[%c0_7, %c0_8] : memref<4x32xbf16, #tpu.memory_space<vmem>>, vector<4x32xbf16>
    %c0_9 = arith.constant 0 : index
    %c0_10 = arith.constant 0 : index
    %5 = vector.load %arg3[%c0_9, %c0_10] : memref<32x1xf32, #tpu.memory_space<vmem>>, vector<32x1xf32>
    %c0_11 = arith.constant 0 : index
    %c0_12 = arith.constant 0 : index
    %6 = vector.load %arg5[%c0_11, %c0_12] : memref<64x1xf32, #tpu.memory_space<vmem>>, vector<64x1xf32>
    %c0_13 = arith.constant 0 : index
    %c0_14 = arith.constant 0 : index
    %7 = vector.load %arg7[%c0_13, %c0_14] : memref<64x1xf32, #tpu.memory_space<vmem>>, vector<64x1xf32>
    %c0_15 = arith.constant 0 : index
    %c0_16 = arith.constant 0 : index
    %8 = vector.load %arg9[%c0_15, %c0_16] : memref<32x1xf32, #tpu.memory_space<vmem>>, vector<32x1xf32>
    %c0_17 = arith.constant 0 : index
    %c0_18 = arith.constant 0 : index
    %9 = vector.load %arg11[%c0_17, %c0_18] : memref<4x1xf32, #tpu.memory_space<vmem>>, vector<4x1xf32>
    %c0_19 = arith.constant 0 : index
    %c0_20 = arith.constant 0 : index
    %10 = memref.load %arg12[%c0_19, %c0_20] : memref<2x4xf32, #tpu.memory_space<smem>>
    %c0_21 = arith.constant 0 : index
    %c1 = arith.constant 1 : index
    %11 = memref.load %arg12[%c0_21, %c1] : memref<2x4xf32, #tpu.memory_space<smem>>
    %c0_22 = arith.constant 0 : index
    %c2 = arith.constant 2 : index
    %12 = memref.load %arg12[%c0_22, %c2] : memref<2x4xf32, #tpu.memory_space<smem>>
    %c0_23 = arith.constant 0 : index
    %c3 = arith.constant 3 : index
    %13 = memref.load %arg12[%c0_23, %c3] : memref<2x4xf32, #tpu.memory_space<smem>>
    %c1_24 = arith.constant 1 : index
    %c0_25 = arith.constant 0 : index
    %14 = memref.load %arg12[%c1_24, %c0_25] : memref<2x4xf32, #tpu.memory_space<smem>>
    %c1_26 = arith.constant 1 : index
    %c1_27 = arith.constant 1 : index
    %15 = memref.load %arg12[%c1_26, %c1_27] : memref<2x4xf32, #tpu.memory_space<smem>>
    %c1_28 = arith.constant 1 : index
    %c2_29 = arith.constant 2 : index
    %16 = memref.load %arg12[%c1_28, %c2_29] : memref<2x4xf32, #tpu.memory_space<smem>>
    %c1_30 = arith.constant 1 : index
    %c3_31 = arith.constant 3 : index
    %17 = memref.load %arg12[%c1_30, %c3_31] : memref<2x4xf32, #tpu.memory_space<smem>>
    %c0_32 = arith.constant 0 : index
    %18 = memref.load %arg13[%c0_32] : memref<2xf32, #tpu.memory_space<smem>>
    %c1_33 = arith.constant 1 : index
    %19 = memref.load %arg13[%c1_33] : memref<2xf32, #tpu.memory_space<smem>>
    %c0_34 = arith.constant 0 : index
    %c0_35 = arith.constant 0 : index
    %20 = memref.load %arg14[%c0_34, %c0_35] : memref<1x2xf32, #tpu.memory_space<smem>>
    %c0_36 = arith.constant 0 : index
    %c1_37 = arith.constant 1 : index
    %21 = memref.load %arg14[%c0_36, %c1_37] : memref<1x2xf32, #tpu.memory_space<smem>>
    %c0_38 = arith.constant 0 : index
    %22 = memref.load %arg15[%c0_38] : memref<1xf32, #tpu.memory_space<smem>>
    %c0_i32 = arith.constant 0 : i32
    %c256_i32 = arith.constant 256 : i32
    %23 = arith.muli %c0_i32, %c256_i32 : i32
    %24 = tpu.assume_multiple %23, 256 : i32
    %25 = arith.index_cast %24 : i32 to index
    %c0_39 = arith.constant 0 : index
    %26 = vector.load %arg1[%25, %c0_39] : memref<256x4xf32, #tpu.memory_space<vmem>>, vector<256x4xf32>
    %27 = arith.truncf %26 : vector<256x4xf32> to vector<256x4xbf16>
    %cst = arith.constant dense<0.000000e+00> : vector<32x256xf32>
    %28 = tpu.matmul %0, %27, %cst {dimension_numbers = #tpu.dot_dimension_numbers<[1], [1], [0], [0], [0, 0, 1, 0], [], []>} : vector<32x4xbf16>, vector<256x4xbf16>, vector<32x256xf32> -> vector<32x256xf32>
    %29 = vector.broadcast %5 : vector<32x1xf32> to vector<32x256xf32>
    %30 = arith.addf %28, %29 : vector<32x256xf32>
    %cst_40 = arith.constant 0.000000e+00 : f32
    %31 = vector.broadcast %cst_40 : f32 to vector<32x256xf32>
    %32 = arith.maximumf %30, %31 : vector<32x256xf32>
    %33 = arith.truncf %32 : vector<32x256xf32> to vector<32x256xbf16>
    %cst_41 = arith.constant dense<0.000000e+00> : vector<64x256xf32>
    %34 = tpu.matmul %1, %33, %cst_41 {dimension_numbers = #tpu.dot_dimension_numbers<[1], [0], [0], [1], [0, 0, 1, 1], [], []>} : vector<64x32xbf16>, vector<32x256xbf16>, vector<64x256xf32> -> vector<64x256xf32>
    %35 = vector.broadcast %6 : vector<64x1xf32> to vector<64x256xf32>
    %36 = arith.addf %34, %35 : vector<64x256xf32>
    %cst_42 = arith.constant 0.000000e+00 : f32
    %37 = vector.broadcast %cst_42 : f32 to vector<64x256xf32>
    %38 = arith.maximumf %36, %37 : vector<64x256xf32>
    %39 = arith.truncf %38 : vector<64x256xf32> to vector<64x256xbf16>
    %cst_43 = arith.constant dense<0.000000e+00> : vector<64x256xf32>
    %40 = tpu.matmul %2, %39, %cst_43 {dimension_numbers = #tpu.dot_dimension_numbers<[1], [0], [0], [1], [0, 0, 1, 1], [], []>} : vector<64x64xbf16>, vector<64x256xbf16>, vector<64x256xf32> -> vector<64x256xf32>
    %41 = vector.broadcast %7 : vector<64x1xf32> to vector<64x256xf32>
    %42 = arith.addf %40, %41 : vector<64x256xf32>
    %cst_44 = arith.constant 0.000000e+00 : f32
    %43 = vector.broadcast %cst_44 : f32 to vector<64x256xf32>
    %44 = arith.maximumf %42, %43 : vector<64x256xf32>
    %45 = arith.truncf %44 : vector<64x256xf32> to vector<64x256xbf16>
    %cst_45 = arith.constant dense<0.000000e+00> : vector<32x256xf32>
    %46 = tpu.matmul %3, %45, %cst_45 {dimension_numbers = #tpu.dot_dimension_numbers<[1], [0], [0], [1], [0, 0, 1, 1], [], []>} : vector<32x64xbf16>, vector<64x256xbf16>, vector<32x256xf32> -> vector<32x256xf32>
    %47 = vector.broadcast %8 : vector<32x1xf32> to vector<32x256xf32>
    %48 = arith.addf %46, %47 : vector<32x256xf32>
    %cst_46 = arith.constant 0.000000e+00 : f32
    %49 = vector.broadcast %cst_46 : f32 to vector<32x256xf32>
    %50 = arith.maximumf %48, %49 : vector<32x256xf32>
    %51 = arith.truncf %50 : vector<32x256xf32> to vector<32x256xbf16>
    %cst_47 = arith.constant dense<0.000000e+00> : vector<4x256xf32>
    %52 = tpu.matmul %4, %51, %cst_47 {dimension_numbers = #tpu.dot_dimension_numbers<[1], [0], [0], [1], [0, 0, 1, 1], [], []>} : vector<4x32xbf16>, vector<32x256xbf16>, vector<4x256xf32> -> vector<4x256xf32>
    %53 = vector.broadcast %9 : vector<4x1xf32> to vector<4x256xf32>
    %54 = arith.addf %52, %53 : vector<4x256xf32>
    %cst_48 = arith.constant 0.000000e+00 : f32
    %55 = vector.broadcast %cst_48 : f32 to vector<4x256xf32>
    %56 = arith.maximumf %54, %55 : vector<4x256xf32>
    %57 = vector.extract_strided_slice %56 {offsets = [0, 0], sizes = [1, 256], strides = [1, 1]} : vector<4x256xf32> to vector<1x256xf32>
    %58 = vector.extract_strided_slice %56 {offsets = [1, 0], sizes = [1, 256], strides = [1, 1]} : vector<4x256xf32> to vector<1x256xf32>
    %59 = vector.extract_strided_slice %56 {offsets = [2, 0], sizes = [1, 256], strides = [1, 1]} : vector<4x256xf32> to vector<1x256xf32>
    %60 = vector.extract_strided_slice %56 {offsets = [3, 0], sizes = [1, 256], strides = [1, 1]} : vector<4x256xf32> to vector<1x256xf32>
    %61 = vector.broadcast %10 : f32 to vector<1x256xf32>
    %62 = arith.mulf %61, %57 : vector<1x256xf32>
    %63 = vector.broadcast %11 : f32 to vector<1x256xf32>
    %64 = arith.mulf %63, %58 : vector<1x256xf32>
    %65 = arith.addf %62, %64 : vector<1x256xf32>
    %66 = vector.broadcast %12 : f32 to vector<1x256xf32>
    %67 = arith.mulf %66, %59 : vector<1x256xf32>
    %68 = arith.addf %65, %67 : vector<1x256xf32>
    %69 = vector.broadcast %13 : f32 to vector<1x256xf32>
    %70 = arith.mulf %69, %60 : vector<1x256xf32>
    %71 = arith.addf %68, %70 : vector<1x256xf32>
    %72 = vector.broadcast %18 : f32 to vector<1x256xf32>
    %73 = arith.addf %71, %72 : vector<1x256xf32>
    %cst_49 = arith.constant 0.000000e+00 : f32
    %74 = vector.broadcast %cst_49 : f32 to vector<1x256xf32>
    %75 = arith.maximumf %73, %74 : vector<1x256xf32>
    %76 = vector.broadcast %14 : f32 to vector<1x256xf32>
    %77 = arith.mulf %76, %57 : vector<1x256xf32>
    %78 = vector.broadcast %15 : f32 to vector<1x256xf32>
    %79 = arith.mulf %78, %58 : vector<1x256xf32>
    %80 = arith.addf %77, %79 : vector<1x256xf32>
    %81 = vector.broadcast %16 : f32 to vector<1x256xf32>
    %82 = arith.mulf %81, %59 : vector<1x256xf32>
    %83 = arith.addf %80, %82 : vector<1x256xf32>
    %84 = vector.broadcast %17 : f32 to vector<1x256xf32>
    %85 = arith.mulf %84, %60 : vector<1x256xf32>
    %86 = arith.addf %83, %85 : vector<1x256xf32>
    %87 = vector.broadcast %19 : f32 to vector<1x256xf32>
    %88 = arith.addf %86, %87 : vector<1x256xf32>
    %cst_50 = arith.constant 0.000000e+00 : f32
    %89 = vector.broadcast %cst_50 : f32 to vector<1x256xf32>
    %90 = arith.maximumf %88, %89 : vector<1x256xf32>
    %91 = vector.broadcast %20 : f32 to vector<1x256xf32>
    %92 = arith.mulf %91, %75 : vector<1x256xf32>
    %93 = vector.broadcast %21 : f32 to vector<1x256xf32>
    %94 = arith.mulf %93, %90 : vector<1x256xf32>
    %95 = arith.addf %92, %94 : vector<1x256xf32>
    %96 = vector.broadcast %22 : f32 to vector<1x256xf32>
    %97 = arith.addf %95, %96 : vector<1x256xf32>
    %c0_51 = arith.constant 0 : index
    %98 = arith.index_cast %24 : i32 to index
    %99 = vector.load %arg16[%c0_51, %98] : memref<1x256xf32, #tpu.memory_space<vmem>>, vector<1x256xf32>
    tpu.vector_store %arg16[%c0_51, %98], %97 {strides = array<i32>} : memref<1x256xf32, #tpu.memory_space<vmem>>, vector<1x256xf32>,
    %c1_i32 = arith.constant 1 : i32
    return
  }
  func.func @transform_0(%arg0: i32) -> (i32, i32) {
    %c0_i32 = arith.constant 0 : i32
    %c0_i32_0 = arith.constant 0 : i32
    return %arg0, %c0_i32 : i32, i32
  }
  func.func @transform_1(%arg0: i32) -> (i32, i32) {
    %c0_i32 = arith.constant 0 : i32
    %c0_i32_0 = arith.constant 0 : i32
    %c0_i32_1 = arith.constant 0 : i32
    return %c0_i32, %c0_i32_0 : i32, i32
  }
  func.func @transform_2(%arg0: i32) -> (i32, i32) {
    %c0_i32 = arith.constant 0 : i32
    %c0_i32_0 = arith.constant 0 : i32
    %c0_i32_1 = arith.constant 0 : i32
    return %c0_i32, %c0_i32_0 : i32, i32
  }
  func.func @transform_3(%arg0: i32) -> (i32, i32) {
    %c0_i32 = arith.constant 0 : i32
    %c0_i32_0 = arith.constant 0 : i32
    %c0_i32_1 = arith.constant 0 : i32
    return %c0_i32, %c0_i32_0 : i32, i32
  }
  func.func @transform_4(%arg0: i32) -> (i32, i32) {
    %c0_i32 = arith.constant 0 : i32
    %c0_i32_0 = arith.constant 0 : i32
    %c0_i32_1 = arith.constant 0 : i32
    return %c0_i32, %c0_i32_0 : i32, i32
  }
  func.func @transform_5(%arg0: i32) -> (i32, i32) {
    %c0_i32 = arith.constant 0 : i32
    %c0_i32_0 = arith.constant 0 : i32
    %c0_i32_1 = arith.constant 0 : i32
    return %c0_i32, %c0_i32_0 : i32, i32
  }
  func.func @transform_6(%arg0: i32) -> (i32, i32) {
    %c0_i32 = arith.constant 0 : i32
    %c0_i32_0 = arith.constant 0 : i32
    %c0_i32_1 = arith.constant 0 : i32
    return %c0_i32, %c0_i32_0 : i32, i32
  }
  func.func @transform_7(%arg0: i32) -> (i32, i32) {
    %c0_i32 = arith.constant 0 : i32
    %c0_i32_0 = arith.constant 0 : i32
    %c0_i32_1 = arith.constant 0 : i32
    return %c0_i32, %c0_i32_0 : i32, i32
  }
  func.func @transform_8(%arg0: i32) -> (i32, i32) {
    %c0_i32 = arith.constant 0 : i32
    %c0_i32_0 = arith.constant 0 : i32
    %c0_i32_1 = arith.constant 0 : i32
    return %c0_i32, %c0_i32_0 : i32, i32
  }
  func.func @transform_9(%arg0: i32) -> (i32, i32) {
    %c0_i32 = arith.constant 0 : i32
    %c0_i32_0 = arith.constant 0 : i32
    %c0_i32_1 = arith.constant 0 : i32
    return %c0_i32, %c0_i32_0 : i32, i32
  }
  func.func @transform_10(%arg0: i32) -> (i32, i32) {
    %c0_i32 = arith.constant 0 : i32
    %c0_i32_0 = arith.constant 0 : i32
    %c0_i32_1 = arith.constant 0 : i32
    return %c0_i32, %c0_i32_0 : i32, i32
  }
  func.func @transform_11(%arg0: i32) -> (i32, i32) {
    %c0_i32 = arith.constant 0 : i32
    %c0_i32_0 = arith.constant 0 : i32
    %c0_i32_1 = arith.constant 0 : i32
    return %c0_i32, %c0_i32_0 : i32, i32
  }
  func.func @transform_12(%arg0: i32) -> i32 {
    %c0_i32 = arith.constant 0 : i32
    %c0_i32_0 = arith.constant 0 : i32
    return %c0_i32 : i32
  }
  func.func @transform_13(%arg0: i32) -> (i32, i32) {
    %c0_i32 = arith.constant 0 : i32
    %c0_i32_0 = arith.constant 0 : i32
    %c0_i32_1 = arith.constant 0 : i32
    return %c0_i32, %c0_i32_0 : i32, i32
  }
  func.func @transform_14(%arg0: i32) -> i32 {
    %c0_i32 = arith.constant 0 : i32
    %c0_i32_0 = arith.constant 0 : i32
    return %c0_i32 : i32
  }
  func.func @transform_15(%arg0: i32) -> (i32, i32) {
    %c0_i32 = arith.constant 0 : i32
    %c0_i32_0 = arith.constant 0 : i32
    return %c0_i32, %arg0 : i32, i32
  }
}

</mosaic_0001>

<bundles_post_ra>
// kernel: linear_net_forward.1
= control target key start
LH: loop header
LB: loop body
LE: loop exit
PB: predicated region body
PF: predicated region fallthrough
CT: control target
= control target key end

     0   :  { %21 = vsyncpa [#allocation5], 0  ;;  %s1524_s0 = inlined_call_operand.vmem [shape: f32[8,4], index: 0, kind: input, shape index: {}]   ;;  %s1525_s1 = inlined_call_operand.vmem [shape: bf16[32,4], index: 1, kind: input, shape index: {}]   ;;  %s1526_s2 = inlined_call_operand.vmem [shape: f32[32,1], index: 2, kind: input, shape index: {}]   ;;  %s1527_s3 = inlined_call_operand.vmem [shape: bf16[64,32], index: 3, kind: input, shape index: {}]   ;;  %s1528_s4 = inlined_call_operand.vmem [shape: f32[64,1], index: 4, kind: input, shape index: {}]   ;;  %s1529_s5 = inlined_call_operand.vmem [shape: bf16[64,64], index: 5, kind: input, shape index: {}]   ;;  %s1530_s6 = inlined_call_operand.vmem [shape: f32[64,1], index: 6, kind: input, shape index: {}]   ;;  %s1531_s7 = inlined_call_operand.vmem [shape: bf16[32,64], index: 7, kind: input, shape index: {}]   ;;  %s1532_s8 = inlined_call_operand.vmem [shape: f32[32,1], index: 8, kind: input, shape index: {}]   ;;  %s1533_s9 = inlined_call_operand.vmem [shape: bf16[4,32], index: 9, kind: input, shape index: {}]   ;;  %s1534_s10 = inlined_call_operand.vmem [shape: f32[4,1], index: 10, kind: input, shape index: {}]   ;;  %s1535_s11 = inlined_call_operand.vmem [shape: f32[2,4], index: 11, kind: input, shape index: {}]   ;;  %s1536_s12 = inlined_call_operand.vmem [shape: f32[2], index: 12, kind: input, shape index: {}]   ;;  %s1537_s13 = inlined_call_operand.vmem [shape: f32[1,2], index: 13, kind: input, shape index: {}]   ;;  %s1538_s14 = inlined_call_operand.<no memory space> [shape: f32[1], index: 14, kind: input, shape index: {}]   ;;  %s1539_s15 = inlined_call_operand.hbm [shape: f32[1,8], index: 15, kind: output, shape index: {}]  }
   0x1   :  { %22 = vsyncpa [#allocation7], 0  ;;  %s62_s20 = sshll.u32 %s1536_s12, 4  ;;  %s63_s20 = int_to_ptr.vmem [resolvable:$true] %s62_s20 }
   0x2   :  { %23 = vsyncpa [#allocation4], 0  ;;  %s52_s23 = sshll.u32 %s1535_s11, 4  ;;  %s1056_s24 = scalar_lea.vmem %s63_s20, 16  ;;  %s53_s23 = int_to_ptr.vmem [resolvable:$true] %s52_s23 }
   0x3   :  { %p1057_p0 = scmp.ne.s32.totalorder %s63_s20, %s1056_s24  ;;  %p1061_p1 = scmp.lt.s32.totalorder %s63_s20, %s63_s20 }
   0x4   :  { %p1062_p2 = scmp.lt.s32.totalorder %s1056_s24, %s1056_s24 }
   0x6   :  { %p1063_p3 = por %p1062_p2, %p1061_p1 }
   0x8   :  { %p1064_p4 = pnand %p1063_p3, %p1057_p0 }
   0xa   :  { %1067 = shalt.err (!%p1064_p4)
}
   0xb   :  { %s1120_s25 = smov [#allocation6]   ;;  %s1068_s26 = scalar_lea.vmem %s53_s23, 32 }
   0xc   :  { %65 = dma.vmem_to_smem %s63_s20, 16, %s1120_s25, [#allocation7]  }
   0xd   :  { %p1069_p5 = scmp.ne.s32.totalorder %s53_s23, %s1068_s26  ;;  %p1073_p6 = scmp.lt.s32.totalorder %s53_s23, %s53_s23 }
   0xe   :  { %p1074_p7 = scmp.lt.s32.totalorder %s1068_s26, %s1068_s26 }
  0x10   :  { %p1075_p8 = por %p1074_p7, %p1073_p6 }
  0x12   :  { %p1076_p9 = pnand %p1075_p8, %p1069_p5 }
  0x14   :  { %1079 = shalt.err (!%p1076_p9)
}
  0x15   :  { %s1121_s12 = smov [#allocation3]   ;;  %s72_s28 = sshll.u32 %s1537_s13, 4  ;;  %s73_s28 = int_to_ptr.vmem [resolvable:$true] %s72_s28 }
  0x16   :  { %55 = dma.vmem_to_smem %s53_s23, 32, %s1121_s12, [#allocation5]  }
  0x17   :  { %s1080_s29 = scalar_lea.vmem %s73_s28, 16  ;;  %p1085_p11 = scmp.lt.s32.totalorder %s73_s28, %s73_s28 }
  0x18   :  { %p1081_p10 = scmp.ne.s32.totalorder %s73_s28, %s1080_s29  ;;  %p1086_p12 = scmp.lt.s32.totalorder %s1080_s29, %s1080_s29 }
  0x1a   :  { %p1087_p13 = por %p1086_p12, %p1085_p11 }
  0x1c   :  { %p1088_p0 = pnand %p1087_p13, %p1081_p10 }
  0x1e   :  { %1091 = shalt.err (!%p1088_p0)
}
  0x1f   :  { %s1122_s30 = smov [#allocation8]  }
  0x20   :  { %75 = dma.vmem_to_smem %s73_s28, 16, %s1122_s30, [#allocation7]  }
  0x21   :  { %1114 = dma.done.wait [#allocation5], 32  }
  0x22   :  { %1115 = vsyncadd [#allocation5], 4294967264 }
  0x23   :  { %1116 = dma.done.wait [#allocation7], 32  }
  0x24   :  { %1117 = vsyncadd [#allocation7], 4294967264 }
  0x25   :  { %87 = sfence }
  0x26   :  { %v168_v0 = vld [vmem:[%s1524_s0 + $0x80] sm:$0xff]  ;;  %v169_v1 = vld [vmem:[%s1524_s0 + $0x88] sm:$0xff]  ;;  %vm230_vm0 = vcmask 31744   ;;  %v170_v5 = vld [vmem:[%s1524_s0 + $0x90] sm:$0xff]  ;;  %v1123_v7 = vmov 0   ;;  %vm410_vm1 = vcmask 261120  }
  0x27   :  { %v152_v2 = vld [vmem:[%s1524_s0] sm:$0xff]  ;;  %v192_v3 = vpack.c.bf16 %v169_v1, %v168_v0  ;;  %v153_v4 = vld [vmem:[%s1524_s0 + $0x8] sm:$0xff]  ;;  %v171_v6 = vld [vmem:[%s1524_s0 + $0x98] sm:$0xff]  ;;  %1042 = vset.pattern.permute.xlu0 %v1123_v7  ;;  %1043 = vset.pattern.permute.xlu1 %v1123_v7  ;;  %vm580_vm2 = vcmask 523264   ;;  %s1475_s28 = sld [smem:[#allocation3 + $0x1]]  ;;  %s1477_s29 = sld [smem:[#allocation3 + $0x2]] }
  0x28   :  { %v184_v8 = vpack.c.bf16 %v153_v4, %v152_v2  ;;  %v193_v9 = vpack.c.bf16 %v171_v6, %v170_v5  ;;  %455 = vmatprep.mubr.bf16.mxu1 %v1123_v7  ;;  %v154_v10 = vld [vmem:[%s1524_s0 + $0x10] sm:$0xff]  ;;  %v155_v11 = vld [vmem:[%s1524_s0 + $0x18] sm:$0xff]  ;;  %v172_v14 = vld [vmem:[%s1524_s0 + $0xa0] sm:$0xff]  ;;  %s1479_s30 = sld [smem:[#allocation3 + $0x3]]  ;;  %s1481_s16 = sld [smem:[#allocation3 + $0x81]] }
  0x29   :  { %1028 = vmatprep.subr.msk.bf16.mxu0 %vm230_vm0, %v192_v3  ;;  %v185_v13 = vpack.c.bf16 %v155_v11, %v154_v10  ;;  %v173_v15 = vld [vmem:[%s1524_s0 + $0xa8] sm:$0xff]  ;;  %v156_v18 = vld [vmem:[%s1524_s0 + $0x20] sm:$0xff]  ;;  %v158_v22 = vld [vmem:[%s1524_s0 + $0x30] sm:$0xff]  ;;  %s1483_s17 = sld [smem:[#allocation3 + $0x82]]  ;;  %s1502_s13 = sld [smem:[#allocation8]] }
  0x2a   :  { %v238_v12 = vsel %vm230_vm0, %v184_v8, 0  ;;  %v194_v17 = vpack.c.bf16 %v173_v15, %v172_v14  ;;  %v157_v19 = vld [vmem:[%s1524_s0 + $0x28] sm:$0xff]  ;;  %v1261_v20 = vld [vmem:[%s1525_s1] sm:$0xff]   ;;  %v159_v23 = vld [vmem:[%s1524_s0 + $0x38] sm:$0xff]  ;;  %s1504_s18 = sld [smem:[#allocation8 + $0x1]] }
  0x2b   :  { %1009 = vmatpush3.bf16.xpose.msra.mxu0 %v238_v12  ;;  %v241_v16 = vsel %vm230_vm0, %v185_v13, 0  ;;  %v114_v21 = vld [vmem:[%s1526_s2] sm:$0xff]  ;;  %1024 = vmatprep.mubr.msk.bf16.mxu0 %vm230_vm0, %v1261_v20  ;;  %v116_v24 = vld [vmem:[%s1526_s2 + $0x10] sm:$0xff]  ;;  %v186_v25 = vpack.c.bf16 %v157_v19, %v156_v18  ;;  %v175_v27 = vld [vmem:[%s1524_s0 + $0xb8] sm:$0xff]  ;;  %v187_v29 = vpack.c.bf16 %v159_v23, %v158_v22 }
  0x2c   :  { %1029 = vmatprep.subr.msk.bf16.mxu0 %vm230_vm0, %v193_v9  ;;  %202 = vperm.xlu0 %1042, %v114_v21   ;;  %v174_v26 = vld [vmem:[%s1524_s0 + $0xb0] sm:$0xff]  ;;  %v115_v28 = vld [vmem:[%s1526_s2 + $0x8] sm:$0xff]  ;;  %v117_v30 = vld [vmem:[%s1526_s2 + $0x18] sm:$0xff] }
  0x2d   :  { %212 = vperm.xlu1 %1043, %v116_v24   ;;  %v244_v31 = vsel %vm230_vm0, %v186_v25, 0  ;;  %v195_v32 = vpack.c.bf16 %v175_v27, %v174_v26  ;;  %v118_v33 = vld [vmem:[%s1528_s4] sm:$0xff]  ;;  %v247_v34 = vsel %vm230_vm0, %v187_v29, 0  ;;  %v119_v35 = vld [vmem:[%s1528_s4 + $0x8] sm:$0xff]  ;;  %v120_v38 = vld [vmem:[%s1528_s4 + $0x10] sm:$0xff] }
  0x2e   :  { %v176_v36 = vld [vmem:[%s1524_s0 + $0xc0] sm:$0xff]  ;;  %v177_v37 = vld [vmem:[%s1524_s0 + $0xc8] sm:$0xff]  ;;  %v121_v39 = vld [vmem:[%s1528_s4 + $0x18] sm:$0xff] }
  0x2f   :  { %v160_v40 = vld [vmem:[%s1524_s0 + $0x40] sm:$0xff]  ;;  %v161_v41 = vld [vmem:[%s1524_s0 + $0x48] sm:$0xff]  ;;  %v196_v42 = vpack.c.bf16 %v177_v37, %v176_v36  ;;  %v178_v46 = vld [vmem:[%s1524_s0 + $0xd0] sm:$0xff] }
  0x30   :  { %207 = vperm.xlu0 %1042, %v115_v28   ;;  %v122_v43 = vld [vmem:[%s1528_s4 + $0x20] sm:$0xff]  ;;  %v123_v44 = vld [vmem:[%s1528_s4 + $0x28] sm:$0xff]  ;;  %v188_v45 = vpack.c.bf16 %v161_v41, %v160_v40  ;;  %v179_v47 = vld [vmem:[%s1524_s0 + $0xd8] sm:$0xff] }
  0x31   :  { %217 = vperm.xlu1 %1043, %v117_v30   ;;  %v124_v48 = vld [vmem:[%s1528_s4 + $0x30] sm:$0xff]  ;;  %v125_v49 = vld [vmem:[%s1528_s4 + $0x38] sm:$0xff]  ;;  %v197_v51 = vpack.c.bf16 %v179_v47, %v178_v46  ;;  %v126_v54 = vld [vmem:[%s1530_s6] sm:$0xff] }
  0x32   :  { %v250_v50 = vsel %vm230_vm0, %v188_v45, 0  ;;  %v162_v52 = vld [vmem:[%s1524_s0 + $0x50] sm:$0xff]  ;;  %v163_v53 = vld [vmem:[%s1524_s0 + $0x58] sm:$0xff]  ;;  %v127_v55 = vld [vmem:[%s1530_s6 + $0x8] sm:$0xff] }
  0x33   :  { %1011 = vmatpush3.bf16.xpose.msra.mxu0 %v241_v16  ;;  %v189_v56 = vpack.c.bf16 %v163_v53, %v162_v52  ;;  %v180_v57 = vld [vmem:[%s1524_s0 + $0xe0] sm:$0xff]  ;;  %v181_v58 = vld [vmem:[%s1524_s0 + $0xe8] sm:$0xff]  ;;  %v128_v59 = vld [vmem:[%s1530_s6 + $0x10] sm:$0xff] }
  0x34   :  { %1030 = vmatprep.subr.msk.bf16.mxu0 %vm230_vm0, %v194_v17  ;;  %352 = vperm.xlu0 %1042, %v118_v33   ;;  %v129_v60 = vld [vmem:[%s1530_s6 + $0x18] sm:$0xff]  ;;  %v198_v62 = vpack.c.bf16 %v181_v58, %v180_v57  ;;  %v164_v63 = vld [vmem:[%s1524_s0 + $0x60] sm:$0xff]  ;;  %v165_v0 = vld [vmem:[%s1524_s0 + $0x68] sm:$0xff] }
  0x35   :  { %357 = vperm.xlu1 %1043, %v119_v35   ;;  %v253_v61 = vsel %vm230_vm0, %v189_v56, 0  ;;  %v130_v1 = vld [vmem:[%s1530_s6 + $0x20] sm:$0xff]  ;;  %v131_v2 = vld [vmem:[%s1530_s6 + $0x28] sm:$0xff]  ;;  %v190_v3 = vpack.c.bf16 %v165_v0, %v164_v63  ;;  %v182_v4 = vld [vmem:[%s1524_s0 + $0xf0] sm:$0xff] }
  0x36   :  { %v183_v5 = vld [vmem:[%s1524_s0 + $0xf8] sm:$0xff]  ;;  %v132_v6 = vld [vmem:[%s1530_s6 + $0x30] sm:$0xff]  ;;  %v134_v13 = vld [vmem:[%s1532_s8] sm:$0xff] }
  0x37   :  { %v133_v8 = vld [vmem:[%s1530_s6 + $0x38] sm:$0xff]  ;;  %v256_v9 = vsel %vm230_vm0, %v190_v3, 0  ;;  %v199_v10 = vpack.c.bf16 %v183_v5, %v182_v4  ;;  %v166_v11 = vld [vmem:[%s1524_s0 + $0x70] sm:$0xff]  ;;  %v135_v14 = vld [vmem:[%s1532_s8 + $0x8] sm:$0xff] }
  0x38   :  { %362 = vperm.xlu0 %1042, %v120_v38   ;;  %v167_v12 = vld [vmem:[%s1524_s0 + $0x78] sm:$0xff]  ;;  %v136_v16 = vld [vmem:[%s1532_s8 + $0x10] sm:$0xff]  ;;  %v138_v19 = vld [vmem:[%s1534_s10] sm:$0xf]  ;;  %s1473_s0 = sld [smem:[#allocation3]]  ;;  %s1499_s10 = sld [smem:[#allocation6 + $0x1]] }
  0x39   :  { %367 = vperm.xlu1 %1043, %v121_v39   ;;  %v191_v15 = vpack.c.bf16 %v167_v12, %v166_v11  ;;  %v137_v17 = vld [vmem:[%s1532_s8 + $0x18] sm:$0xff]  ;;  %v1045_v21 = vld [vmem:[%s1525_s1 + $0x8] sm:$0xff]   ;;  %v1046_v53 = vld [vmem:[%s1527_s3] sm:$0xff]   ;;  %s1487_s1 = sld [smem:[#allocation3 + $0x83]]  ;;  %s1489_s8 = sld [smem:[#allocation6]] }
  0x3a   :  { %v1049_v56 = vld [vmem:[%s1527_s3 + $0x18] sm:$0xff]  }
  0x3b   :  { %1013 = vmatpush3.bf16.xpose.msra.mxu0 %v244_v31  ;;  %v259_v18 = vsel %vm230_vm0, %v191_v15, 0 }
  0x3c   :  { %1031 = vmatprep.subr.msk.bf16.mxu0 %vm230_vm0, %v195_v32  ;;  %372 = vperm.xlu0 %1042, %v122_v43  }
  0x3d   :  { %377 = vperm.xlu1 %1043, %v123_v44  }
  0x40   :  { %382 = vperm.xlu0 %1042, %v124_v48  }
  0x41   :  { %387 = vperm.xlu1 %1043, %v125_v49  }
  0x43   :  { %1015 = vmatpush3.bf16.xpose.msra.mxu0 %v247_v34 }
  0x44   :  { %1032 = vmatprep.subr.msk.bf16.mxu0 %vm230_vm0, %v196_v42  ;;  %522 = vperm.xlu0 %1042, %v126_v54   ;;  %v1047_v54 = vld [vmem:[%s1527_s3 + $0x8] sm:$0xff]  }
  0x45   :  { %527 = vperm.xlu1 %1043, %v127_v55   ;;  %v1048_v55 = vld [vmem:[%s1527_s3 + $0x10] sm:$0xff]  }
  0x48   :  { %532 = vperm.xlu0 %1042, %v128_v59  }
  0x49   :  { %537 = vperm.xlu1 %1043, %v129_v60  }
  0x4b   :  { %1017 = vmatpush3.bf16.xpose.msra.mxu0 %v250_v50 }
  0x4c   :  { %1033 = vmatprep.subr.msk.bf16.mxu0 %vm230_vm0, %v197_v51  ;;  %542 = vperm.xlu0 %1042, %v130_v1  }
  0x4d   :  { %547 = vperm.xlu1 %1043, %v131_v2  }
  0x50   :  { %552 = vperm.xlu0 %1042, %v132_v6  }
  0x51   :  { %557 = vperm.xlu1 %1043, %v133_v8  }
  0x53   :  { %1019 = vmatpush3.bf16.xpose.msra.mxu0 %v253_v61 }
  0x54   :  { %1034 = vmatprep.subr.msk.bf16.mxu0 %vm230_vm0, %v198_v62  ;;  %692 = vperm.xlu0 %1042, %v134_v13  }
  0x55   :  { %697 = vperm.xlu1 %1043, %v135_v14  }
  0x58   :  { %702 = vperm.xlu0 %1042, %v136_v16  }
  0x59   :  { %707 = vperm.xlu1 %1043, %v137_v17  }
  0x5b   :  { %1021 = vmatpush3.bf16.xpose.msra.mxu0 %v256_v9 }
  0x5c   :  { %1035 = vmatprep.subr.msk.bf16.mxu0 %vm230_vm0, %v199_v10  ;;  %793 = vperm.xlu0 %1042, %v138_v19  }
  0x63   :  { %1023 = vmatpush3.bf16.xpose.msra.mxu0 %v259_v18 }
  0x6a   :  { %1025 = vmatmul.mubr.msk.bf16.vlgmr.msra.gmra.mrb[0].mxu0 %vm230_vm0, %v1261_v20 }
  0x6b   :  { %1026 = vmatprep.mubr.msk.bf16.mxu0 %vm230_vm0, %v1045_v21 }
  0x72   :  { %1027 = vmatmul.mubr.msk.bf16.gmra.mrb[4].mxu0 %vm230_vm0, %v1045_v21 }
  0x73   :  { %831 = vmatprep.mubr.bf16.mxu0 %v1123_v7 }
  0xab   :  { %v203_v22 = vpop.permute.xlu0 %202 }
  0xac   :  { %v213_v31 = vpop.permute.xlu1 %212 }
  0xaf   :  { %v208_v26 = vpop.permute.xlu0 %207 }
  0xb0   :  { %v218_v41 = vpop.permute.xlu1 %217 }
  0xb3   :  { %v353_v57 = vpop.permute.xlu0 %352 }
  0xb4   :  { %v358_v61 = vpop.permute.xlu1 %357 }
  0xb7   :  { %v363_v9 = vpop.permute.xlu0 %362 }
  0xb8   :  { %v368_v14 = vpop.permute.xlu1 %367 }
 0x13d   :  { %v319_v23 = vpop.f32.mrb[0].mxu0 }
 0x13e   :  { %v320_v24 = vadd.f32 %v319_v23, %v203_v22  ;;  %v321_v25 = vpop.f32.mrb[1].mxu0 }
 0x13f   :  { %v322_v27 = vadd.f32 %v321_v25, %v203_v22  ;;  %v323_v28 = vpop.f32.mrb[2].mxu0 }
 0x140   :  { %v324_v29 = vadd.f32 %v323_v28, %v208_v26  ;;  %v325_v30 = vpop.f32.mrb[3].mxu0  ;;  %v338_v33 = vmax.f32 %v320_v24, 0.0 }
 0x141   :  { %v326_v32 = vadd.f32 %v325_v30, %v208_v26  ;;  %v339_v20 = vmax.f32 %v322_v27, 0.0  ;;  %v373_v26 = vpop.permute.xlu0 %372 }
 0x142   :  { %v340_v34 = vmax.f32 %v324_v29, 0.0 }
 0x143   :  { %v341_v35 = vmax.f32 %v326_v32, 0.0 }
 0x144   :  { %v346_v36 = vpack.c.bf16 %v340_v34, %v338_v33 }
 0x145   :  { %v329_v37 = vpop.f32.mrb[4].mxu0  ;;  %v347_v38 = vpack.c.bf16 %v341_v35, %v339_v20 }
 0x146   :  { %v330_v39 = vadd.f32 %v329_v37, %v213_v31  ;;  %v331_v40 = vpop.f32.mrb[5].mxu0 }
 0x147   :  { %v332_v42 = vadd.f32 %v331_v40, %v213_v31  ;;  %v333_v43 = vpop.f32.mrb[6].mxu0  ;;  %423 = vmatprep.subr.bf16.mxu1 %v347_v38  ;;  %v378_v31 = vpop.permute.xlu1 %377 }
 0x148   :  { %v334_v44 = vadd.f32 %v333_v43, %v218_v41  ;;  %v335_v45 = vpop.f32.mrb[7].mxu0  ;;  %424 = vmatpush1.bf16.msra.mxu1 %v346_v36  ;;  %v342_v47 = vmax.f32 %v330_v39, 0.0 }
 0x149   :  { %v336_v46 = vadd.f32 %v335_v45, %v218_v41  ;;  %v343_v49 = vmax.f32 %v332_v42, 0.0  ;;  %v383_v41 = vpop.permute.xlu0 %382 }
 0x14a   :  { %v344_v48 = vmax.f32 %v334_v44, 0.0 }
 0x14b   :  { %v345_v50 = vmax.f32 %v336_v46, 0.0  ;;  %v388_v46 = vpop.permute.xlu1 %387 }
 0x14c   :  { %v348_v51 = vpack.c.bf16 %v344_v48, %v342_v47 }
 0x14d   :  { %v349_v52 = vpack.c.bf16 %v345_v50, %v343_v49 }
 0x14f   :  { %425 = vmatprep.subr.bf16.mxu1 %v349_v52 }
 0x150   :  { %426 = vmatpush1.bf16.msra.mxu1 %v348_v51 }
 0x153   :  { %991 = vmatmul.mubr.msk.bf16.vlgmr.msra.gmra.mrb[0].mxu1 %vm410_vm1, %v1046_v53 }
 0x154   :  { %465 = vmatprep.mubr.bf16.mxu1 %v1123_v7 }
 0x15b   :  { %992 = vmatmul.mubr.msk.bf16.gmra.mrb[4].mxu1 %vm410_vm1, %v1047_v54 }
 0x15c   :  { %475 = vmatprep.mubr.bf16.mxu1 %v1123_v7 }
 0x163   :  { %993 = vmatmul.mubr.msk.bf16.gmra.mrb[8].mxu1 %vm410_vm1, %v1048_v55 }
 0x164   :  { %485 = vmatprep.mubr.bf16.mxu1 %v1123_v7 }
 0x16b   :  { %994 = vmatmul.mubr.msk.bf16.gmra.mrb[12].mxu1 %vm410_vm1, %v1049_v56 }
 0x16c   :  { %625 = vmatprep.mubr.bf16.mxu1 %v1123_v7 }
 0x226   :  { %v457_v58 = vpop.f32.mrb[0].mxu1 }
 0x227   :  { %v458_v59 = vadd.f32 %v457_v58, %v353_v57  ;;  %v459_v60 = vpop.f32.mrb[1].mxu1  ;;  %v1050_v58 = vld [vmem:[%s1529_s5] sm:$0xff]  }
 0x228   :  { %v460_v62 = vadd.f32 %v459_v60, %v353_v57  ;;  %v461_v63 = vpop.f32.mrb[2].mxu1  ;;  %v1052_v60 = vld [vmem:[%s1529_s5 + $0x10] sm:$0xff]  }
 0x229   :  { %v462_v0 = vadd.f32 %v461_v63, %v358_v61  ;;  %v463_v1 = vpop.f32.mrb[3].mxu1  ;;  %v496_v3 = vmax.f32 %v458_v59, 0.0  ;;  %v1051_v59 = vld [vmem:[%s1529_s5 + $0x8] sm:$0xff]  }
 0x22a   :  { %v464_v2 = vadd.f32 %v463_v1, %v358_v61  ;;  %v497_v5 = vmax.f32 %v460_v62, 0.0  ;;  %v1053_v61 = vld [vmem:[%s1529_s5 + $0x18] sm:$0xff]   ;;  %v523_v62 = vpop.permute.xlu0 %522 }
 0x22b   :  { %v498_v4 = vmax.f32 %v462_v0, 0.0 }
 0x22c   :  { %v499_v6 = vmax.f32 %v464_v2, 0.0  ;;  %v528_v2 = vpop.permute.xlu1 %527 }
 0x22d   :  { %v512_v8 = vpack.c.bf16 %v498_v4, %v496_v3 }
 0x22e   :  { %v513_v10 = vpack.c.bf16 %v499_v6, %v497_v5  ;;  %v467_v11 = vpop.f32.mrb[4].mxu1 }
 0x22f   :  { %v468_v12 = vadd.f32 %v467_v11, %v363_v9  ;;  %v469_v13 = vpop.f32.mrb[5].mxu1 }
 0x230   :  { %v470_v15 = vadd.f32 %v469_v13, %v363_v9  ;;  %v471_v16 = vpop.f32.mrb[6].mxu1  ;;  %593 = vmatprep.subr.bf16.mxu1 %v513_v10 }
 0x231   :  { %v472_v17 = vadd.f32 %v471_v16, %v368_v14  ;;  %v473_v18 = vpop.f32.mrb[7].mxu1  ;;  %594 = vmatpush1.bf16.msra.mxu1 %v512_v8  ;;  %v500_v21 = vmax.f32 %v468_v12, 0.0 }
 0x232   :  { %v474_v19 = vadd.f32 %v473_v18, %v368_v14  ;;  %v501_v23 = vmax.f32 %v470_v15, 0.0  ;;  %v533_v14 = vpop.permute.xlu0 %532 }
 0x233   :  { %v502_v22 = vmax.f32 %v472_v17, 0.0 }
 0x234   :  { %v503_v24 = vmax.f32 %v474_v19, 0.0  ;;  %v538_v19 = vpop.permute.xlu1 %537 }
 0x235   :  { %v514_v25 = vpack.c.bf16 %v502_v22, %v500_v21 }
 0x236   :  { %v515_v27 = vpack.c.bf16 %v503_v24, %v501_v23  ;;  %v477_v28 = vpop.f32.mrb[8].mxu1 }
 0x237   :  { %v478_v29 = vadd.f32 %v477_v28, %v373_v26  ;;  %v479_v30 = vpop.f32.mrb[9].mxu1 }
 0x238   :  { %v480_v32 = vadd.f32 %v479_v30, %v373_v26  ;;  %v481_v33 = vpop.f32.mrb[10].mxu1  ;;  %595 = vmatprep.subr.bf16.mxu1 %v515_v27 }
 0x239   :  { %v482_v34 = vadd.f32 %v481_v33, %v378_v31  ;;  %v483_v20 = vpop.f32.mrb[11].mxu1  ;;  %596 = vmatpush1.bf16.msra.mxu1 %v514_v25  ;;  %v504_v36 = vmax.f32 %v478_v29, 0.0 }
 0x23a   :  { %v484_v35 = vadd.f32 %v483_v20, %v378_v31  ;;  %v505_v38 = vmax.f32 %v480_v32, 0.0  ;;  %v543_v31 = vpop.permute.xlu0 %542 }
 0x23b   :  { %v506_v37 = vmax.f32 %v482_v34, 0.0 }
 0x23c   :  { %v507_v39 = vmax.f32 %v484_v35, 0.0  ;;  %v548_v35 = vpop.permute.xlu1 %547 }
 0x23d   :  { %v516_v40 = vpack.c.bf16 %v506_v37, %v504_v36 }
 0x23e   :  { %v517_v42 = vpack.c.bf16 %v507_v39, %v505_v38  ;;  %v487_v43 = vpop.f32.mrb[12].mxu1 }
 0x23f   :  { %v488_v44 = vadd.f32 %v487_v43, %v383_v41  ;;  %v489_v45 = vpop.f32.mrb[13].mxu1 }
 0x240   :  { %v490_v47 = vadd.f32 %v489_v45, %v383_v41  ;;  %v491_v48 = vpop.f32.mrb[14].mxu1  ;;  %597 = vmatprep.subr.bf16.mxu1 %v517_v42 }
 0x241   :  { %v492_v49 = vadd.f32 %v491_v48, %v388_v46  ;;  %v493_v50 = vpop.f32.mrb[15].mxu1  ;;  %598 = vmatpush1.bf16.msra.mxu1 %v516_v40  ;;  %v508_v52 = vmax.f32 %v488_v44, 0.0 }
 0x242   :  { %v494_v51 = vadd.f32 %v493_v50, %v388_v46  ;;  %v509_v54 = vmax.f32 %v490_v47, 0.0  ;;  %v553_v46 = vpop.permute.xlu0 %552 }
 0x243   :  { %v510_v53 = vmax.f32 %v492_v49, 0.0 }
 0x244   :  { %v511_v55 = vmax.f32 %v494_v51, 0.0  ;;  %v558_v51 = vpop.permute.xlu1 %557 }
 0x245   :  { %v518_v56 = vpack.c.bf16 %v510_v53, %v508_v52 }
 0x246   :  { %v519_v57 = vpack.c.bf16 %v511_v55, %v509_v54 }
 0x248   :  { %599 = vmatprep.subr.bf16.mxu1 %v519_v57 }
 0x249   :  { %600 = vmatpush1.bf16.msra.mxu1 %v518_v56 }
 0x24c   :  { %999 = vmatmul.mubr.msk.bf16.vlgmr.msra.gmra.mrb[16].mxu1 %vm580_vm2, %v1050_v58 }
 0x24d   :  { %635 = vmatprep.mubr.bf16.mxu1 %v1123_v7 }
 0x254   :  { %1000 = vmatmul.mubr.msk.bf16.gmra.mrb[20].mxu1 %vm580_vm2, %v1051_v59 }
 0x255   :  { %645 = vmatprep.mubr.bf16.mxu1 %v1123_v7 }
 0x25c   :  { %1001 = vmatmul.mubr.msk.bf16.gmra.mrb[24].mxu1 %vm580_vm2, %v1052_v60 }
 0x25d   :  { %655 = vmatprep.mubr.bf16.mxu1 %v1123_v7 }
 0x264   :  { %1002 = vmatmul.mubr.msk.bf16.gmra.mrb[28].mxu1 %vm580_vm2, %v1053_v61 }
 0x265   :  { %758 = vmatprep.mubr.bf16.mxu1 %v1123_v7 }
 0x31f   :  { %v627_v63 = vpop.f32.mrb[16].mxu1 }
 0x320   :  { %v628_v0 = vadd.f32 %v627_v63, %v523_v62  ;;  %v629_v1 = vpop.f32.mrb[17].mxu1  ;;  %v1054_v63 = vld [vmem:[%s1531_s7] sm:$0xff]  }
 0x321   :  { %v630_v3 = vadd.f32 %v629_v1, %v523_v62  ;;  %v631_v4 = vpop.f32.mrb[18].mxu1  ;;  %v693_v1 = vpop.permute.xlu0 %692 }
 0x322   :  { %v632_v5 = vadd.f32 %v631_v4, %v528_v2  ;;  %v633_v6 = vpop.f32.mrb[19].mxu1  ;;  %v666_v9 = vmax.f32 %v628_v0, 0.0  ;;  %v1055_v0 = vld [vmem:[%s1531_s7 + $0x8] sm:$0xff]  }
 0x323   :  { %v634_v8 = vadd.f32 %v633_v6, %v528_v2  ;;  %v667_v11 = vmax.f32 %v630_v3, 0.0 }
 0x324   :  { %v668_v10 = vmax.f32 %v632_v5, 0.0  ;;  %v698_v5 = vpop.permute.xlu1 %697 }
 0x325   :  { %v669_v12 = vmax.f32 %v634_v8, 0.0 }
 0x326   :  { %v682_v13 = vpack.c.bf16 %v668_v10, %v666_v9 }
 0x327   :  { %v683_v15 = vpack.c.bf16 %v669_v12, %v667_v11  ;;  %v637_v16 = vpop.f32.mrb[20].mxu1 }
 0x328   :  { %v638_v17 = vadd.f32 %v637_v16, %v533_v14  ;;  %v639_v18 = vpop.f32.mrb[21].mxu1  ;;  %v703_v16 = vpop.permute.xlu0 %702 }
 0x329   :  { %v640_v21 = vadd.f32 %v639_v18, %v533_v14  ;;  %v641_v22 = vpop.f32.mrb[22].mxu1  ;;  %726 = vmatprep.subr.bf16.mxu1 %v683_v15 }
 0x32a   :  { %v642_v23 = vadd.f32 %v641_v22, %v538_v19  ;;  %v643_v24 = vpop.f32.mrb[23].mxu1  ;;  %727 = vmatpush1.bf16.msra.mxu1 %v682_v13  ;;  %v670_v26 = vmax.f32 %v638_v17, 0.0  ;;  %v708_v22 = vpop.permute.xlu1 %707 }
 0x32b   :  { %v644_v25 = vadd.f32 %v643_v24, %v538_v19  ;;  %v671_v28 = vmax.f32 %v640_v21, 0.0 }
 0x32c   :  { %v672_v27 = vmax.f32 %v642_v23, 0.0 }
 0x32d   :  { %v673_v29 = vmax.f32 %v644_v25, 0.0 }
 0x32e   :  { %v684_v30 = vpack.c.bf16 %v672_v27, %v670_v26 }
 0x32f   :  { %v685_v32 = vpack.c.bf16 %v673_v29, %v671_v28  ;;  %v647_v33 = vpop.f32.mrb[24].mxu1 }
 0x330   :  { %v648_v34 = vadd.f32 %v647_v33, %v543_v31  ;;  %v649_v20 = vpop.f32.mrb[25].mxu1 }
 0x331   :  { %v650_v36 = vadd.f32 %v649_v20, %v543_v31  ;;  %v651_v37 = vpop.f32.mrb[26].mxu1  ;;  %728 = vmatprep.subr.bf16.mxu1 %v685_v32  ;;  %v794_v20 = vpop.permute.xlu0 %793 }
 0x332   :  { %v652_v38 = vadd.f32 %v651_v37, %v548_v35  ;;  %v653_v39 = vpop.f32.mrb[27].mxu1  ;;  %729 = vmatpush1.bf16.msra.mxu1 %v684_v30  ;;  %v674_v41 = vmax.f32 %v648_v34, 0.0  ;;  %v113_v34 = vld [vmem:[%s1533_s9] sm:$0x3]  ;;  %s1485_s9 = sld [smem:[#allocation3 + $0x80]] }
 0x333   :  { %v654_v40 = vadd.f32 %v653_v39, %v548_v35  ;;  %v675_v43 = vmax.f32 %v650_v36, 0.0  ;;  %v856_v39 = vstv %s1477_s29 }
 0x334   :  { %v676_v42 = vmax.f32 %v652_v38, 0.0  ;;  %v845_v38 = vstv %s1475_s28 }
 0x335   :  { %v677_v44 = vmax.f32 %v654_v40, 0.0  ;;  %v867_v40 = vstv %s1479_s30 }
 0x336   :  { %v686_v45 = vpack.c.bf16 %v676_v42, %v674_v41 }
 0x337   :  { %v687_v47 = vpack.c.bf16 %v677_v44, %v675_v43  ;;  %v657_v48 = vpop.f32.mrb[28].mxu1  ;;  %v842_v44 = vstv %s1473_s0 }
 0x338   :  { %v658_v49 = vadd.f32 %v657_v48, %v553_v46  ;;  %v659_v50 = vpop.f32.mrb[29].mxu1  ;;  %v883_v48 = vstv %s1485_s9 }
 0x339   :  { %v660_v52 = vadd.f32 %v659_v50, %v553_v46  ;;  %v661_v53 = vpop.f32.mrb[30].mxu1  ;;  %730 = vmatprep.subr.bf16.mxu1 %v687_v47  ;;  %v897_v46 = vstv %s1483_s17 }
 0x33a   :  { %v662_v54 = vadd.f32 %v661_v53, %v558_v51  ;;  %v663_v55 = vpop.f32.mrb[31].mxu1  ;;  %731 = vmatpush1.bf16.msra.mxu1 %v686_v45  ;;  %v678_v57 = vmax.f32 %v658_v49, 0.0  ;;  %v886_v45 = vstv %s1481_s16  ;;  %v908_v49 = vstv %s1487_s1 }
 0x33b   :  { %v664_v56 = vadd.f32 %v663_v55, %v558_v51  ;;  %v679_v59 = vmax.f32 %v660_v52, 0.0  ;;  %v878_v55 = vstv %s1489_s8 }
 0x33c   :  { %v680_v58 = vmax.f32 %v662_v54, 0.0 }
 0x33d   :  { %v681_v60 = vmax.f32 %v664_v56, 0.0 }
 0x33e   :  { %v688_v61 = vpack.c.bf16 %v680_v58, %v678_v57 }
 0x33f   :  { %v689_v62 = vpack.c.bf16 %v681_v60, %v679_v59 }
 0x341   :  { %732 = vmatprep.subr.bf16.mxu1 %v689_v62 }
 0x342   :  { %733 = vmatpush1.bf16.msra.mxu1 %v688_v61 }
 0x345   :  { %1005 = vmatmul.mubr.msk.bf16.vlgmr.msra.gmra.mrb[32].mxu1 %vm580_vm2, %v1054_v63 }
 0x346   :  { %768 = vmatprep.mubr.bf16.mxu1 %v1123_v7 }
 0x34d   :  { %1006 = vmatmul.mubr.msk.bf16.gmra.mrb[36].mxu1 %vm580_vm2, %v1055_v0 }
 0x418   :  { %v760_v2 = vpop.f32.mrb[32].mxu1 }
 0x419   :  { %v761_v3 = vadd.f32 %v760_v2, %v693_v1  ;;  %v762_v4 = vpop.f32.mrb[33].mxu1 }
 0x41a   :  { %v763_v6 = vadd.f32 %v762_v4, %v693_v1  ;;  %v764_v8 = vpop.f32.mrb[34].mxu1 }
 0x41b   :  { %v765_v9 = vadd.f32 %v764_v8, %v698_v5  ;;  %v766_v10 = vpop.f32.mrb[35].mxu1  ;;  %v779_v12 = vmax.f32 %v761_v3, 0.0 }
 0x41c   :  { %v767_v11 = vadd.f32 %v766_v10, %v698_v5  ;;  %v780_v14 = vmax.f32 %v763_v6, 0.0 }
 0x41d   :  { %v781_v13 = vmax.f32 %v765_v9, 0.0 }
 0x41e   :  { %v782_v7 = vmax.f32 %v767_v11, 0.0 }
 0x41f   :  { %v787_v15 = vpack.c.bf16 %v781_v13, %v779_v12 }
 0x420   :  { %v788_v17 = vpack.c.bf16 %v782_v7, %v780_v14  ;;  %v770_v18 = vpop.f32.mrb[36].mxu1 }
 0x421   :  { %v771_v19 = vadd.f32 %v770_v18, %v703_v16  ;;  %v772_v21 = vpop.f32.mrb[37].mxu1 }
 0x422   :  { %v773_v23 = vadd.f32 %v772_v21, %v703_v16  ;;  %v774_v24 = vpop.f32.mrb[38].mxu1  ;;  %799 = vmatprep.subr.bf16.mxu0 %v788_v17 }
 0x423   :  { %v775_v25 = vadd.f32 %v774_v24, %v708_v22  ;;  %v776_v26 = vpop.f32.mrb[39].mxu1  ;;  %800 = vmatpush1.bf16.msra.mxu0 %v787_v15  ;;  %v783_v28 = vmax.f32 %v771_v19, 0.0  ;;  %v919_v19 = vstv %s1499_s10 }
 0x424   :  { %v777_v27 = vadd.f32 %v776_v26, %v708_v22  ;;  %v784_v30 = vmax.f32 %v773_v23, 0.0 }
 0x425   :  { %v785_v29 = vmax.f32 %v775_v25, 0.0 }
 0x426   :  { %v786_v31 = vmax.f32 %v777_v27, 0.0  ;;  %v924_v27 = vstv %s1502_s13 }
 0x427   :  { %v789_v32 = vpack.c.bf16 %v785_v29, %v783_v28 }
 0x428   :  { %v790_v33 = vpack.c.bf16 %v786_v31, %v784_v30 }
 0x42a   :  { %801 = vmatprep.subr.bf16.mxu0 %v790_v33  ;;  %v927_v33 = vstv %s1504_s18 }
 0x42b   :  { %802 = vmatpush1.bf16.msra.mxu0 %v789_v32 }
 0x42e   :  { %1007 = vmatmul.mubr.msk.bf16.vlgmr.msra.gmra.mrb[8].mxu0 %vm410_vm1, %v113_v34 }
 0x501   :  { %v833_v35 = vpop.f32.mrb[8].mxu0 }
 0x502   :  { %v834_v36 = vadd.f32 %v833_v35, %v794_v20  ;;  %v835_v37 = vpop.f32.mrb[9].mxu0 }
 0x503   :  { %v836_v41 = vadd.f32 %v835_v37, %v794_v20  ;;  %v837_v42 = vpop.f32.mrb[10].mxu0  ;;  %v1124_v37 = vmov 1966171168  }
 0x504   :  { %v840_v43 = vmax.f32 %v834_v36, 0.0  ;;  %v838_v47 = vpop.f32.mrb[11].mxu0  ;;  %v941_v42 = vlaneseq }
 0x505   :  { %v841_v50 = vmax.f32 %v836_v41, 0.0 }
 0x506   :  { %v846_v51 = vmul.f32 %v845_v38, %v840_v43  ;;  %v857_v52 = vmul.f32 %v856_v39, %v840_v43  ;;  %v868_v53 = vmul.f32 %v867_v40, %v840_v43  ;;  %v843_v54 = vmul.f32 %v842_v44, %v840_v43 }
 0x507   :  { %v887_v56 = vmul.f32 %v886_v45, %v840_v43  ;;  %v898_v57 = vmul.f32 %v897_v46, %v840_v43  ;;  %v884_v60 = vmul.f32 %v883_v48, %v840_v43  ;;  %v909_v61 = vmul.f32 %v908_v49, %v840_v43 }
 0x508   :  { %v850_v58 = vrot.slane %v846_v51, 1  ;;  %v861_v59 = vrot.slane %v857_v52, 2  ;;  %v872_v62 = vrot.slane %v868_v53, 3  ;;  %v844_v0 = vmul.f32 %v842_v44, %v841_v50 }
 0x509   :  { %v891_v63 = vrot.slane %v887_v56, 1  ;;  %v847_v1 = vmul.f32 %v845_v38, %v841_v50  ;;  %v902_v3 = vrot.slane %v898_v57, 2  ;;  %v858_v4 = vmul.f32 %v856_v39, %v841_v50 }
 0x50a   :  { %v854_v2 = vadd.f32 %v850_v58, %v843_v54  ;;  %v869_v5 = vmul.f32 %v867_v40, %v841_v50  ;;  %v888_v9 = vmul.f32 %v886_v45, %v841_v50  ;;  %v899_v10 = vmul.f32 %v897_v46, %v841_v50 }
 0x50b   :  { %v895_v6 = vadd.f32 %v891_v63, %v884_v60  ;;  %v851_v8 = vrot.slane %v847_v1, 1  ;;  %v913_v12 = vrot.slane %v909_v61, 3  ;;  %v862_v13 = vrot.slane %v858_v4, 2 }
 0x50c   :  { %v865_v11 = vadd.f32 %v861_v59, %v854_v2  ;;  %v885_v14 = vmul.f32 %v883_v48, %v841_v50  ;;  %v892_v16 = vrot.slane %v888_v9, 1  ;;  %v910_v17 = vmul.f32 %v908_v49, %v841_v50 }
 0x50d   :  { %v906_v7 = vadd.f32 %v902_v3, %v895_v6  ;;  %v855_v15 = vadd.f32 %v851_v8, %v844_v0  ;;  %v873_v21 = vrot.slane %v869_v5, 3  ;;  %v903_v25 = vrot.slane %v899_v10, 2 }
 0x50e   :  { %v876_v18 = vadd.f32 %v872_v62, %v865_v11  ;;  %v896_v24 = vadd.f32 %v892_v16, %v885_v14  ;;  %v914_v31 = vrot.slane %v910_v17, 3  ;;  %v939_v38 = vunpack.c.l.s4 %v1124_v37 }
 0x50f   :  { %v917_v22 = vadd.f32 %v913_v12, %v906_v7  ;;  %v866_v23 = vadd.f32 %v862_v13, %v855_v15  ;;  %v932_v46 = vstv %s1538_s14  ;;  %v942_v49 = vshrl.u32 %v941_v42, 7 }
 0x510   :  { %v879_v26 = vadd.f32 %v878_v55, %v876_v18  ;;  %v907_v30 = vadd.f32 %v903_v25, %v896_v24  ;;  %v940_v48 = vunpack.c.0.s8 %v939_v38  ;;  %vm955_vm3 = vcmp.lt.s32.totalorder %v941_v42, 256 }
 0x511   :  { %v920_v28 = vadd.f32 %v919_v19, %v917_v22  ;;  %v877_v29 = vadd.f32 %v873_v21, %v866_v23 }
 0x512   :  { %v881_v32 = vmax.f32 %v879_v26, 0.0  ;;  %v918_v35 = vadd.f32 %v914_v31, %v907_v30  ;;  %v943_v53 = vsub.s32 %v940_v48, %v942_v49 }
 0x513   :  { %v922_v34 = vmax.f32 %v920_v28, 0.0  ;;  %v880_v20 = vadd.f32 %v878_v55, %v877_v29 }
 0x514   :  { %v925_v36 = vmul.f32 %v924_v27, %v881_v32  ;;  %v921_v41 = vadd.f32 %v919_v19, %v918_v35 }
 0x515   :  { %v928_v39 = vmul.f32 %v927_v33, %v922_v34  ;;  %v882_v40 = vmax.f32 %v880_v20, 0.0 }
 0x516   :  { %v923_v44 = vmax.f32 %v921_v41, 0.0 }
 0x517   :  { %v930_v43 = vadd.f32 %v928_v39, %v925_v36  ;;  %v926_v45 = vmul.f32 %v924_v27, %v882_v40 }
 0x518   :  { %v929_v47 = vmul.f32 %v927_v33, %v923_v44 }
 0x519   :  { %v933_v50 = vadd.f32 %v932_v46, %v930_v43 }
 0x51a   :  { %v931_v51 = vadd.f32 %v929_v47, %v926_v45 }
 0x51c   :  { %v934_v52 = vadd.f32 %v932_v46, %v931_v51 }
 0x51e   :  { %v937_v54 = vcombine.low %v933_v50, %v934_v52 }
 0x520   :  { %v944_v55 = vrot.slane %v937_v54, %v943_v53 }
 0x522   :  { %v951_v56 = vrot.slane %v944_v55, %v943_v53 }
 0x524   :  { %957 = vst.msk [vmem:[#allocation9] sm:$0x3] %vm955_vm3, %v951_v56 }
 0x525   :  { %962 = vsyncadd [#allocation4], 16  ;;  %s1125_s20 = smov [#allocation9]  }
 0x526   :  { %s964_s3 = sshll.u32 %s1125_s20, 4  ;;  %s965_s3 = int_to_ptr.vmem [resolvable:$true] %s964_s3 }
 0x527   :  { %s1092_s21 = scalar_lea.vmem %s965_s3, 16  ;;  %s1096_s22 = scalar_lea.vmem %s965_s3, 32 }
 0x528   :  { %p1093_p1 = scmp.ne.s32.totalorder %s965_s3, %s1092_s21  ;;  %p1097_p2 = scmp.lt.s32.totalorder %s965_s3, %s965_s3 }
 0x529   :  { %p1098_p3 = scmp.lt.s32.totalorder %s1096_s22, %s1092_s21 }
 0x52b   :  { %p1099_p4 = por %p1098_p3, %p1097_p2 }
 0x52d   :  { %p1100_p5 = pnand %p1099_p4, %p1093_p1 }
 0x52f   :  { %1103 = shalt.err (!%p1100_p5)
}
 0x530   :  { %s1104_s24 = scalar_lea.hbm %s1539_s15, 16 }
 0x531   :  { %p1105_p6 = scmp.ne.s32.totalorder %s1539_s15, %s1104_s24  ;;  %p1108_p7 = scmp.lt.u32.totalorder %s1104_s24, %s1539_s15 }
 0x533   :  { %p1110_p8 = pnand %p1108_p7, %p1105_p6 }
 0x535   :  { %1113 = shalt.err (!%p1110_p8)
}
 0x536   :  { %967 = dma.vmem_to_hbm [thread:$0]  %s965_s3, 16, %s1539_s15, [#allocation4]  }
 0x537   :  { %1118 = dma.done.wait [#allocation4], 32  }
 0x538   :  { %1119 = vsyncadd [#allocation4], 4294967264 }
 0x539   :  { %971 = vsyncpa [#allocation4], 1 }
 0x53a   :  { %972 = vsyncpa [#allocation5], 1 }
 0x53b   :  { %973 = vsyncpa [#allocation7], 1 }

</bundles_post_ra>
